<compile_context>
chip_gen: v5e
topology: v5e:2x2
jax: 0.10.0
libtpu: 0.0.40
codegen_flags: <defaults>
</compile_context>

<pallas_src>
import math

import jax
import jax.numpy as jnp
import numpy as np
from jax.experimental import pallas as pl
from jax.experimental.pallas import tpu as pltpu

LANES = 128
HIGH = jax.lax.Precision.HIGHEST


# ---------------------------------------------------------------------------
# Kernel: one grid step == one decode step; h / stack carried in VMEM scratch.
# ---------------------------------------------------------------------------
def stack_rnn_seq_kernel(emb_ref, h0_ref, st0_ref, w_ref,
                         logits_ref, h_out_ref, st_out_ref,
                         h_sc, st_sc):
    f32 = jnp.float32
    i = pl.program_id(0)
    H = h0_ref.shape[1]
    D, SW = st0_ref.shape
    G = 3 * H                  # width of the fused [r|z|n] gate block (lanes)
    b_off = 2 * H + SW         # slab row of the fused hidden-side bias

    # ---- step 0: load the carries -------------------------------------------
    @pl.when(i == 0)
    def _():
        h_sc[...] = h0_ref[...]
        st_sc[...] = st0_ref[...]

    h = h_sc[...]                          # (1, H)   previous hidden
    st = st_sc[...]                        # (D, SW)  previous stack

    # ---- fused, VMEM-resident weight slab views -------------------------------
    w_h = w_ref[0:H, :]                    # [W_hr|W_hz|W_hn|W_sc|W_si]  (H, 128)
    w_dec = w_ref[H:2 * H, :]              # decoder                     (H, 128)
    w_s = w_ref[2 * H:2 * H + SW, :]       # stack-top part of W_ih      (SW, 128)
    b_h = w_ref[b_off:b_off + 1, :]        # [b_hr|b_hz|b_hn|b_sc|b_si]  (1, 128)
    b_dec = w_ref[b_off + 8:b_off + 9, :]  # decoder bias                (1, 128)

    # ---- one fused hidden-side matmul: GRU h-gates + controls + stack input ---
    gh = jnp.dot(h, w_h, preferred_element_type=f32) + b_h               # (1, 128)

    # stack controls: softmax over {push, pop, no-op}
    sc = gh[:, G:G + 3]
    sc = sc - jnp.max(sc, axis=1, keepdims=True)
    e = jnp.exp(sc)
    controls = e / jnp.sum(e, axis=1, keepdims=True)                     # (1, 3)
    a_push, a_pop, a_noop = controls[:, 0:1], controls[:, 1:2], controls[:, 2:3]

    # stack input
    si = jnp.tanh(gh[:, G + 3:G + 3 + SW])                               # (1, SW)

    # stack augmentation
    zeros_row = jnp.zeros((1, SW), f32)
    st_down = jnp.concatenate([st[1:, :], zeros_row], axis=0)            # (D, SW)
    st_up = jnp.concatenate([si, st[:-1, :]], axis=0)                    # (D, SW)
    new_st = a_noop * st + a_push * st_up + a_pop * st_down
    st_sc[...] = new_st

    # ---- GRU cell (PyTorch gate order r, z, n) --------------------------------
    # Input-side preactivations = folded embedding row (emb @ W_i* + b_i*)
    # plus the stack-top contribution.  No concatenation needed.
    stack_top = new_st[0:1, :]                                           # (1, SW)
    gx = emb_ref[0] + jnp.dot(stack_top, w_s, preferred_element_type=f32)  # (1,128)

    rz = jax.nn.sigmoid(gx[:, 0:2 * H] + gh[:, 0:2 * H])
    r, z = rz[:, 0:H], rz[:, H:2 * H]
    n = jnp.tanh(gx[:, 2 * H:G] + r * gh[:, 2 * H:G])
    h_new = (1.0 - z) * n + z * h                                        # (1, H)
    h_sc[...] = h_new

    # ---- decoder (lane-dense 128-wide output block) ---------------------------
    logits_ref[0] = jnp.dot(h_new, w_dec, preferred_element_type=f32) + b_dec

    # ---- last step: write back final hidden / stack ---------------------------
    @pl.when(i == pl.num_programs(0) - 1)
    def _():
        h_out_ref[...] = h_new
        st_out_ref[...] = new_st


# ---------------------------------------------------------------------------
# One-time parameter preparation (hoisted out of the decode hot path).
# ---------------------------------------------------------------------------
def prepare_kernel_params(params):
    """Fuse / transpose / pad all weights into lane-dense slabs. Run ONCE."""
    H = params["embedding"].shape[1]
    W = params["w_si"].shape[0]
    O = params["w_dec"].shape[0]
    G = 3 * H
    assert G + 3 + W <= LANES and O <= LANES, "sizes must fit in 128 lanes"

    w_ih = params["w_ih"]                    # (3H, H+W), rows [r|z|n]
    w_hh = params["w_hh"]                    # (3H, H)
    b_ih = params["b_ih"].reshape(-1)        # (3H,)
    b_hh = params["b_hh"].reshape(-1)        # (3H,)

    # Folded embedding table: E' = E @ W_ih[:, :H].T + b_ih  -> (vocab, 128)
    emb_gates = jnp.dot(params["embedding"], w_ih[:, :H].T, precision=HIGH) + b_ih[None, :]
    emb_fold = jnp.zeros((params["embedding"].shape[0], LANES), jnp.float32)
    emb_fold = emb_fold.at[:, :G].set(emb_gates)

    # Hidden-side fused weights: [W_hr|W_hz|W_hn | W_sc | W_si]  -> (H, 128)
    w_h = jnp.zeros((H, LANES), jnp.float32)
    w_h = w_h.at[:, :G].set(w_hh.T)
    w_h = w_h.at[:, G:G + 3].set(params["w_sc"].T)
    w_h = w_h.at[:, G + 3:G + 3 + W].set(params["w_si"].T)

    # Decoder weights -> (H, 128)
    w_dec = jnp.zeros((H, LANES), jnp.float32).at[:, :O].set(params["w_dec"].T)

    # Stack-top part of the GRU input weights -> (W, 128)
    w_s = jnp.zeros((W, LANES), jnp.float32).at[:, :G].set(w_ih[:, H:].T)

    # Fused bias rows (each padded to its own 8-row tile so slices are aligned)
    b_h = jnp.zeros((LANES,), jnp.float32)
    b_h = b_h.at[:G].set(b_hh)
    b_h = b_h.at[G:G + 3].set(params["b_sc"].reshape(-1))
    b_h = b_h.at[G + 3:G + 3 + W].set(params["b_si"].reshape(-1))
    b_dec = jnp.zeros((LANES,), jnp.float32).at[:O].set(params["b_dec"].reshape(-1))
    b_h_blk = jnp.zeros((8, LANES), jnp.float32).at[0].set(b_h)
    b_dec_blk = jnp.zeros((8, LANES), jnp.float32).at[0].set(b_dec)

    # Single slab: rows [0:H]=w_h, [H:2H]=w_dec, [2H:2H+W]=w_s,
    #              [2H+W]=b_h, [2H+W+8]=b_dec.   Shape (2H+W+16, 128).
    slab = jnp.concatenate([w_h, w_dec, w_s, b_h_blk, b_dec_blk], axis=0)

    return {"emb_fold": emb_fold, "slab": slab, "H": H, "W": W, "O": O}


# ---------------------------------------------------------------------------
# Wrappers
# ---------------------------------------------------------------------------
def stack_rnn_forward_sequence(tokens, hidden, stack, prep):
    """Apply forward() over a whole token sequence inside one kernel.

    tokens: (T,) int32; hidden: (1,1,H); stack: (1,D,W).
    Returns (logits (T,O), next_hidden (1,1,H), new_stack (1,D,W)).
    """
    H, W, O = prep["H"], prep["W"], prep["O"]
    slab = prep["slab"]
    T = int(tokens.shape[0])
    D = int(stack.shape[1])
    R = int(slab.shape[0])

    emb_seq = prep["emb_fold"][tokens].reshape(T, 1, LANES)   # one gather / sequence
    h0 = hidden.reshape(1, H).astype(jnp.float32)
    st0 = stack.reshape(D, W).astype(jnp.float32)

    logits_pad, h_new, st_new = pl.pallas_call(
        stack_rnn_seq_kernel,
        grid=(T,),
        in_specs=[
            pl.BlockSpec((1, 1, LANES), lambda i: (i, 0, 0)),   # folded emb row / step
            pl.BlockSpec((1, H), lambda i: (0, 0)),             # initial hidden
            pl.BlockSpec((D, W), lambda i: (0, 0)),             # initial stack
            pl.BlockSpec((R, LANES), lambda i: (0, 0)),         # fused weights (resident)
        ],
        out_specs=(
            pl.BlockSpec((1, 1, LANES), lambda i: (i, 0, 0)),   # per-step logits
            pl.BlockSpec((1, H), lambda i: (0, 0)),             # final hidden
            pl.BlockSpec((D, W), lambda i: (0, 0)),             # final stack
        ),
        out_shape=(
            jax.ShapeDtypeStruct((T, 1, LANES), jnp.float32),
            jax.ShapeDtypeStruct((1, H), jnp.float32),
            jax.ShapeDtypeStruct((D, W), jnp.float32),
        ),
        scratch_shapes=[
            pltpu.VMEM((1, H), jnp.float32),   # hidden-state carry
            pltpu.VMEM((D, W), jnp.float32),   # stack carry
        ],
        compiler_params=pltpu.CompilerParams(
            dimension_semantics=("arbitrary",)),  # sequential: carries h / stack
    )(emb_seq, h0, st0, slab)

    logits = logits_pad.reshape(T, LANES)[:, :O]
    return logits, h_new.reshape(1, 1, H), st_new.reshape(1, D, W)


def stack_rnn_forward(token, hidden, stack, prep):
    """Single decode step, matching the PyTorch forward(inp, hidden, stack) API."""
    tokens = jnp.asarray(token, jnp.int32).reshape(1)
    return stack_rnn_forward_sequence(tokens, hidden, stack, prep)


# ---------------------------------------------------------------------------
# Synthetic parameters (PyTorch-style shapes) and pure-JAX reference.
# ---------------------------------------------------------------------------
def init_params(key, input_size, hidden_size, output_size, stack_width):
    H, W, O = hidden_size, stack_width, output_size
    rnn_in = H + W
    ks = jax.random.split(key, 11)

    def uni(k, shape, fan_in):
        bound = 1.0 / math.sqrt(fan_in)
        return jax.random.uniform(k, shape, jnp.float32, -bound, bound)

    return {
        "embedding": jax.random.normal(ks[0], (input_size, H), jnp.float32),
        "w_sc": uni(ks[1], (3, H), H),           # stack_controls_layer.weight
        "b_sc": uni(ks[2], (1, 3), H),
        "w_si": uni(ks[3], (W, H), H),           # stack_input_layer.weight
        "b_si": uni(ks[4], (1, W), H),
        "w_ih": uni(ks[5], (3 * H, rnn_in), H),  # GRU weight_ih_l0 (r|z|n)
        "w_hh": uni(ks[6], (3 * H, H), H),       # GRU weight_hh_l0 (r|z|n)
        "b_ih": uni(ks[7], (1, 3 * H), H),
        "b_hh": uni(ks[8], (1, 3 * H), H),
        "w_dec": uni(ks[9], (O, H), H),          # decoder.weight
        "b_dec": uni(ks[10], (1, O), H),
    }


def ref_forward_step(token, hidden, stack, params):
    """Pure-JAX mirror of StackAugmentedRNN.forward (GRU, 1 layer, unidir)."""
    H = params["embedding"].shape[1]
    D, W = stack.shape[1], stack.shape[2]
    emb = params["embedding"][token]                       # (H,)
    h = hidden.reshape(H)
    st = stack.reshape(D, W)

    sc = jnp.dot(params["w_sc"], h, precision=HIGH) + params["b_sc"].reshape(-1)
    controls = jax.nn.softmax(sc)
    si = jnp.tanh(jnp.dot(params["w_si"], h, precision=HIGH) + params["b_si"].reshape(-1))

    st_down = jnp.concatenate([st[1:], jnp.zeros((1, W), jnp.float32)], axis=0)
    st_up = jnp.concatenate([si[None, :], st[:-1]], axis=0)
    new_st = controls[2] * st + controls[0] * st_up + controls[1] * st_down

    x = jnp.concatenate([emb, new_st[0]], axis=0)          # (H + W,)
    gi = jnp.dot(params["w_ih"], x, precision=HIGH) + params["b_ih"].reshape(-1)
    gh = jnp.dot(params["w_hh"], h, precision=HIGH) + params["b_hh"].reshape(-1)
    r = jax.nn.sigmoid(gi[:H] + gh[:H])
    z = jax.nn.sigmoid(gi[H:2 * H] + gh[H:2 * H])
    n = jnp.tanh(gi[2 * H:] + r * gh[2 * H:])
    h_new = (1.0 - z) * n + z * h
    out = jnp.dot(params["w_dec"], h_new, precision=HIGH) + params["b_dec"].reshape(-1)
    return out, h_new.reshape(1, 1, H), new_st.reshape(1, D, W)


if __name__ == "__main__":
    input_size = 16     # vocab size
    hidden_size = 32
    output_size = 16
    stack_width = 8
    stack_depth = 8
    seq_len = 8

    key = jax.random.PRNGKey(0)
    k_params, k_hid, k_stk, k_tok = jax.random.split(key, 4)

    params = init_params(k_params, input_size, hidden_size, output_size, stack_width)
    prep = prepare_kernel_params(params)    # one-time weight fusion / padding

    tokens = jax.random.randint(k_tok, (seq_len,), 0, input_size, dtype=jnp.int32)
    hidden = 0.1 * jax.random.normal(k_hid, (1, 1, hidden_size), jnp.float32)
    stack = 0.1 * jax.random.normal(k_stk, (1, stack_depth, stack_width), jnp.float32)

    logits, next_hidden, new_stack = stack_rnn_forward_sequence(tokens, hidden, stack, prep)
    jax.block_until_ready((logits, next_hidden, new_stack))

    assert logits.shape == (seq_len, output_size)
    assert next_hidden.shape == (1, 1, hidden_size)
    assert new_stack.shape == (1, stack_depth, stack_width)

    # Correctness check against a step-wise pure-JAX mirror of the PyTorch forward.
    ref_logits = []
    h_ref, st_ref = hidden, stack
    for t in range(seq_len):
        o, h_ref, st_ref = ref_forward_step(tokens[t], h_ref, st_ref, params)
        ref_logits.append(o)
    ref_logits = jnp.stack(ref_logits)

    np.testing.assert_allclose(np.asarray(logits), np.asarray(ref_logits),
                               rtol=5e-3, atol=5e-3)
    np.testing.assert_allclose(np.asarray(next_hidden), np.asarray(h_ref),
                               rtol=5e-3, atol=5e-3)
    np.testing.assert_allclose(np.asarray(new_stack), np.asarray(st_ref),
                               rtol=5e-3, atol=5e-3)

    print("KERNEL_OK")
</pallas_src>

<mosaic_0001>
module attributes {stable_mosaic.version = 11 : i64} {
  func.func @stack_rnn_seq_kernel(%arg0: i32, %arg1: memref<1x1x128xf32, #tpu.memory_space<vmem>>, %arg2: memref<1x32xf32, #tpu.memory_space<vmem>>, %arg3: memref<8x8xf32, #tpu.memory_space<vmem>>, %arg4: memref<88x128xf32, #tpu.memory_space<vmem>>, %arg5: memref<1x1x128xf32, #tpu.memory_space<vmem>>, %arg6: memref<1x32xf32, #tpu.memory_space<vmem>>, %arg7: memref<8x8xf32, #tpu.memory_space<vmem>>, %arg8: memref<1x32xf32, #tpu.memory_space<vmem>>, %arg9: memref<8x8xf32, #tpu.memory_space<vmem>>) attributes {dimension_semantics = [#tpu.dimension_semantics<arbitrary>], iteration_bounds = array<i64: 8>, scalar_prefetch = 0 : i64, scratch_operands = 2 : i64, tpu.core_type = #tpu.core_type<tc>, window_params = [{transform_indices = @transform_0, window_bounds = array<i64: 1, 1, 128>}, {pipeline_mode = #tpu.pipeline_mode<synchronous>, transform_indices = @transform_1, window_bounds = array<i64: 1, 32>}, {pipeline_mode = #tpu.pipeline_mode<synchronous>, transform_indices = @transform_2, window_bounds = array<i64: 8, 8>}, {pipeline_mode = #tpu.pipeline_mode<synchronous>, transform_indices = @transform_3, window_bounds = array<i64: 88, 128>}, {transform_indices = @transform_4, window_bounds = array<i64: 1, 1, 128>}, {pipeline_mode = #tpu.pipeline_mode<synchronous>, transform_indices = @transform_5, window_bounds = array<i64: 1, 32>}, {pipeline_mode = #tpu.pipeline_mode<synchronous>, transform_indices = @transform_6, window_bounds = array<i64: 8, 8>}]} {
    %c0_i32 = arith.constant 0 : i32
    %0 = arith.cmpi eq, %arg0, %c0_i32 : i32
    %1 = arith.extui %0 : i1 to i32
    %c0_i32_0 = arith.constant 0 : i32
    %2 = arith.cmpi ne, %1, %c0_i32_0 : i32
    scf.if %2 {
      %c0_28 = arith.constant 0 : index
      %c0_29 = arith.constant 0 : index
      %75 = vector.load %arg2[%c0_28, %c0_29] : memref<1x32xf32, #tpu.memory_space<vmem>>, vector<1x32xf32>
      %c0_30 = arith.constant 0 : index
      %c0_31 = arith.constant 0 : index
      %76 = vector.load %arg8[%c0_30, %c0_31] : memref<1x32xf32, #tpu.memory_space<vmem>>, vector<1x32xf32>
      tpu.vector_store %arg8[%c0_30, %c0_31], %75 {strides = array<i32>} : memref<1x32xf32, #tpu.memory_space<vmem>>, vector<1x32xf32>,
      %c0_32 = arith.constant 0 : index
      %c0_33 = arith.constant 0 : index
      %77 = vector.load %arg3[%c0_32, %c0_33] : memref<8x8xf32, #tpu.memory_space<vmem>>, vector<8x8xf32>
      %c0_34 = arith.constant 0 : index
      %c0_35 = arith.constant 0 : index
      %78 = vector.load %arg9[%c0_34, %c0_35] : memref<8x8xf32, #tpu.memory_space<vmem>>, vector<8x8xf32>
      tpu.vector_store %arg9[%c0_34, %c0_35], %77 {strides = array<i32>} : memref<8x8xf32, #tpu.memory_space<vmem>>, vector<8x8xf32>,
    } else {
    }
    %c0 = arith.constant 0 : index
    %c0_1 = arith.constant 0 : index
    %3 = vector.load %arg8[%c0, %c0_1] : memref<1x32xf32, #tpu.memory_space<vmem>>, vector<1x32xf32>
    %c0_2 = arith.constant 0 : index
    %c0_3 = arith.constant 0 : index
    %4 = vector.load %arg9[%c0_2, %c0_3] : memref<8x8xf32, #tpu.memory_space<vmem>>, vector<8x8xf32>
    %c0_4 = arith.constant 0 : index
    %c0_5 = arith.constant 0 : index
    %5 = vector.load %arg4[%c0_4, %c0_5] : memref<88x128xf32, #tpu.memory_space<vmem>>, vector<32x128xf32>
    %c32 = arith.constant 32 : index
    %c0_6 = arith.constant 0 : index
    %6 = vector.load %arg4[%c32, %c0_6] : memref<88x128xf32, #tpu.memory_space<vmem>>, vector<32x128xf32>
    %c64 = arith.constant 64 : index
    %c0_7 = arith.constant 0 : index
    %7 = vector.load %arg4[%c64, %c0_7] : memref<88x128xf32, #tpu.memory_space<vmem>>, vector<8x128xf32>
    %c72 = arith.constant 72 : index
    %c0_8 = arith.constant 0 : index
    %8 = vector.load %arg4[%c72, %c0_8] : memref<88x128xf32, #tpu.memory_space<vmem>>, vector<1x128xf32>
    %c80 = arith.constant 80 : index
    %c0_9 = arith.constant 0 : index
    %9 = vector.load %arg4[%c80, %c0_9] : memref<88x128xf32, #tpu.memory_space<vmem>>, vector<1x128xf32>
    %cst = arith.constant dense<0.000000e+00> : vector<1x128xf32>
    %10 = tpu.matmul %3, %5, %cst {dimension_numbers = #tpu.dot_dimension_numbers<[1], [0], [0], [1], [0, 0, 1, 1], [], []>} : vector<1x32xf32>, vector<32x128xf32>, vector<1x128xf32> -> vector<1x128xf32>
    %11 = arith.addf %10, %8 : vector<1x128xf32>
    %12 = vector.extract_strided_slice %11 {offsets = [0, 96], sizes = [1, 3], strides = [1, 1]} : vector<1x128xf32> to vector<1x3xf32>
    %cst_10 = arith.constant dense<0xFF800000> : vector<1xf32>
    %13 = vector.multi_reduction <maximumf>, %12, %cst_10 [1] : vector<1x3xf32> to vector<1xf32>
    %14 = vector.shape_cast %13 : vector<1xf32> to vector<1x1xf32>
    %15 = vector.broadcast %14 : vector<1x1xf32> to vector<1x3xf32>
    %16 = arith.subf %12, %15 : vector<1x3xf32>
    %17 = math.exp %16 : vector<1x3xf32>
    %cst_11 = arith.constant dense<0.000000e+00> : vector<1xf32>
    %18 = vector.multi_reduction <add>, %17, %cst_11 [1] : vector<1x3xf32> to vector<1xf32>
    %19 = vector.shape_cast %18 : vector<1xf32> to vector<1x1xf32>
    %20 = vector.broadcast %19 : vector<1x1xf32> to vector<1x3xf32>
    %21 = arith.divf %17, %20 : vector<1x3xf32>
    %22 = vector.extract_strided_slice %21 {offsets = [0, 0], sizes = [1, 1], strides = [1, 1]} : vector<1x3xf32> to vector<1x1xf32>
    %23 = vector.extract_strided_slice %21 {offsets = [0, 1], sizes = [1, 1], strides = [1, 1]} : vector<1x3xf32> to vector<1x1xf32>
    %24 = vector.extract_strided_slice %21 {offsets = [0, 2], sizes = [1, 1], strides = [1, 1]} : vector<1x3xf32> to vector<1x1xf32>
    %25 = vector.extract_strided_slice %11 {offsets = [0, 99], sizes = [1, 8], strides = [1, 1]} : vector<1x128xf32> to vector<1x8xf32>
    %26 = math.tanh %25 : vector<1x8xf32>
    %cst_12 = arith.constant 0.000000e+00 : f32
    %27 = vector.broadcast %cst_12 : f32 to vector<1x8xf32>
    %28 = vector.extract_strided_slice %4 {offsets = [1, 0], sizes = [7, 8], strides = [1, 1]} : vector<8x8xf32> to vector<7x8xf32>
    %29 = tpu.concatenate %28, %27 in 0 : vector<7x8xf32>, vector<1x8xf32> -> vector<8x8xf32>
    %30 = vector.extract_strided_slice %4 {offsets = [0, 0], sizes = [7, 8], strides = [1, 1]} : vector<8x8xf32> to vector<7x8xf32>
    %31 = tpu.concatenate %26, %30 in 0 : vector<1x8xf32>, vector<7x8xf32> -> vector<8x8xf32>
    %32 = vector.broadcast %24 : vector<1x1xf32> to vector<8x8xf32>
    %33 = arith.mulf %32, %4 : vector<8x8xf32>
    %34 = vector.broadcast %22 : vector<1x1xf32> to vector<8x8xf32>
    %35 = arith.mulf %34, %31 : vector<8x8xf32>
    %36 = arith.addf %33, %35 : vector<8x8xf32>
    %37 = vector.broadcast %23 : vector<1x1xf32> to vector<8x8xf32>
    %38 = arith.mulf %37, %29 : vector<8x8xf32>
    %39 = arith.addf %36, %38 : vector<8x8xf32>
    %c0_13 = arith.constant 0 : index
    %c0_14 = arith.constant 0 : index
    %40 = vector.load %arg9[%c0_13, %c0_14] : memref<8x8xf32, #tpu.memory_space<vmem>>, vector<8x8xf32>
    tpu.vector_store %arg9[%c0_13, %c0_14], %39 {strides = array<i32>} : memref<8x8xf32, #tpu.memory_space<vmem>>, vector<8x8xf32>,
    %41 = vector.extract_strided_slice %39 {offsets = [0, 0], sizes = [1, 8], strides = [1, 1]} : vector<8x8xf32> to vector<1x8xf32>
    %c0_15 = arith.constant 0 : index
    %c0_16 = arith.constant 0 : index
    %c0_17 = arith.constant 0 : index
    %42 = vector.load %arg1[%c0_15, %c0_16, %c0_17] : memref<1x1x128xf32, #tpu.memory_space<vmem>>, vector<1x1x128xf32>
    %43 = vector.shape_cast %42 : vector<1x1x128xf32> to vector<1x128xf32>
    %cst_18 = arith.constant dense<0.000000e+00> : vector<1x128xf32>
    %44 = tpu.matmul %41, %7, %cst_18 {dimension_numbers = #tpu.dot_dimension_numbers<[1], [0], [0], [1], [0, 0, 1, 1], [], []>} : vector<1x8xf32>, vector<8x128xf32>, vector<1x128xf32> -> vector<1x128xf32>
    %45 = arith.addf %43, %44 : vector<1x128xf32>
    %46 = vector.extract_strided_slice %45 {offsets = [0, 0], sizes = [1, 64], strides = [1, 1]} : vector<1x128xf32> to vector<1x64xf32>
    %47 = vector.extract_strided_slice %11 {offsets = [0, 0], sizes = [1, 64], strides = [1, 1]} : vector<1x128xf32> to vector<1x64xf32>
    %48 = arith.addf %46, %47 : vector<1x64xf32>
    %49 = arith.negf %48 : vector<1x64xf32>
    %50 = math.exp %49 : vector<1x64xf32>
    %cst_19 = arith.constant 1.000000e+00 : f32
    %51 = vector.broadcast %cst_19 : f32 to vector<1x64xf32>
    %52 = arith.addf %51, %50 : vector<1x64xf32>
    %53 = arith.divf %51, %52 : vector<1x64xf32>
    %54 = vector.extract_strided_slice %53 {offsets = [0, 0], sizes = [1, 32], strides = [1, 1]} : vector<1x64xf32> to vector<1x32xf32>
    %55 = vector.extract_strided_slice %53 {offsets = [0, 32], sizes = [1, 32], strides = [1, 1]} : vector<1x64xf32> to vector<1x32xf32>
    %56 = vector.extract_strided_slice %45 {offsets = [0, 64], sizes = [1, 32], strides = [1, 1]} : vector<1x128xf32> to vector<1x32xf32>
    %57 = vector.extract_strided_slice %11 {offsets = [0, 64], sizes = [1, 32], strides = [1, 1]} : vector<1x128xf32> to vector<1x32xf32>
    %58 = arith.mulf %54, %57 : vector<1x32xf32>
    %59 = arith.addf %56, %58 : vector<1x32xf32>
    %60 = math.tanh %59 : vector<1x32xf32>
    %cst_20 = arith.constant 1.000000e+00 : f32
    %61 = vector.broadcast %cst_20 : f32 to vector<1x32xf32>
    %62 = arith.subf %61, %55 : vector<1x32xf32>
    %63 = arith.mulf %62, %60 : vector<1x32xf32>
    %64 = arith.mulf %55, %3 : vector<1x32xf32>
    %65 = arith.addf %63, %64 : vector<1x32xf32>
    %c0_21 = arith.constant 0 : index
    %c0_22 = arith.constant 0 : index
    %66 = vector.load %arg8[%c0_21, %c0_22] : memref<1x32xf32, #tpu.memory_space<vmem>>, vector<1x32xf32>
    tpu.vector_store %arg8[%c0_21, %c0_22], %65 {strides = array<i32>} : memref<1x32xf32, #tpu.memory_space<vmem>>, vector<1x32xf32>,
    %cst_23 = arith.constant dense<0.000000e+00> : vector<1x128xf32>
    %67 = tpu.matmul %65, %6, %cst_23 {dimension_numbers = #tpu.dot_dimension_numbers<[1], [0], [0], [1], [0, 0, 1, 1], [], []>} : vector<1x32xf32>, vector<32x128xf32>, vector<1x128xf32> -> vector<1x128xf32>
    %68 = arith.addf %67, %9 : vector<1x128xf32>
    %c0_24 = arith.constant 0 : index
    %c0_25 = arith.constant 0 : index
    %c0_26 = arith.constant 0 : index
    %69 = vector.load %arg5[%c0_24, %c0_25, %c0_26] : memref<1x1x128xf32, #tpu.memory_space<vmem>>, vector<1x1x128xf32>
    %70 = vector.shape_cast %69 : vector<1x1x128xf32> to vector<1x128xf32>
    %71 = vector.shape_cast %68 : vector<1x128xf32> to vector<1x1x128xf32>
    tpu.vector_store %arg5[%c0_24, %c0_25, %c0_26], %71 {strides = array<i32>} : memref<1x1x128xf32, #tpu.memory_space<vmem>>, vector<1x1x128xf32>,
    %c7_i32 = arith.constant 7 : i32
    %72 = arith.cmpi eq, %arg0, %c7_i32 : i32
    %73 = arith.extui %72 : i1 to i32
    %c0_i32_27 = arith.constant 0 : i32
    %74 = arith.cmpi ne, %73, %c0_i32_27 : i32
    scf.if %74 {
      %c0_28 = arith.constant 0 : index
      %c0_29 = arith.constant 0 : index
      %75 = vector.load %arg6[%c0_28, %c0_29] : memref<1x32xf32, #tpu.memory_space<vmem>>, vector<1x32xf32>
      tpu.vector_store %arg6[%c0_28, %c0_29], %65 {strides = array<i32>} : memref<1x32xf32, #tpu.memory_space<vmem>>, vector<1x32xf32>,
      %c0_30 = arith.constant 0 : index
      %c0_31 = arith.constant 0 : index
      %76 = vector.load %arg7[%c0_30, %c0_31] : memref<8x8xf32, #tpu.memory_space<vmem>>, vector<8x8xf32>
      tpu.vector_store %arg7[%c0_30, %c0_31], %39 {strides = array<i32>} : memref<8x8xf32, #tpu.memory_space<vmem>>, vector<8x8xf32>,
    } else {
    }
    return
  }
  func.func @transform_0(%arg0: i32) -> (i32, i32, i32) {
    %c0_i32 = arith.constant 0 : i32
    %c0_i32_0 = arith.constant 0 : i32
    %c0_i32_1 = arith.constant 0 : i32
    return %arg0, %c0_i32, %c0_i32_0 : i32, i32, i32
  }
  func.func @transform_1(%arg0: i32) -> (i32, i32) {
    %c0_i32 = arith.constant 0 : i32
    %c0_i32_0 = arith.constant 0 : i32
    %c0_i32_1 = arith.constant 0 : i32
    return %c0_i32, %c0_i32_0 : i32, i32
  }
  func.func @transform_2(%arg0: i32) -> (i32, i32) {
    %c0_i32 = arith.constant 0 : i32
    %c0_i32_0 = arith.constant 0 : i32
    %c0_i32_1 = arith.constant 0 : i32
    return %c0_i32, %c0_i32_0 : i32, i32
  }
  func.func @transform_3(%arg0: i32) -> (i32, i32) {
    %c0_i32 = arith.constant 0 : i32
    %c0_i32_0 = arith.constant 0 : i32
    %c0_i32_1 = arith.constant 0 : i32
    return %c0_i32, %c0_i32_0 : i32, i32
  }
  func.func @transform_4(%arg0: i32) -> (i32, i32, i32) {
    %c0_i32 = arith.constant 0 : i32
    %c0_i32_0 = arith.constant 0 : i32
    %c0_i32_1 = arith.constant 0 : i32
    return %arg0, %c0_i32, %c0_i32_0 : i32, i32, i32
  }
  func.func @transform_5(%arg0: i32) -> (i32, i32) {
    %c0_i32 = arith.constant 0 : i32
    %c0_i32_0 = arith.constant 0 : i32
    %c0_i32_1 = arith.constant 0 : i32
    return %c0_i32, %c0_i32_0 : i32, i32
  }
  func.func @transform_6(%arg0: i32) -> (i32, i32) {
    %c0_i32 = arith.constant 0 : i32
    %c0_i32_0 = arith.constant 0 : i32
    %c0_i32_1 = arith.constant 0 : i32
    return %c0_i32, %c0_i32_0 : i32, i32
  }
}

</mosaic_0001>

<bundles_post_ra>
// kernel: tpu_custom_call.1
= control target key start
LH: loop header
LB: loop body
LE: loop exit
PB: predicated region body
PF: predicated region fallthrough
CT: control target
= control target key end

     0   :  { %12 = vsyncpa [#allocation5], 0  ;;  %s1316_s0 = inlined_call_operand.hbm [shape: f32[8,1,128], index: 0, kind: input, shape index: {}]   ;;  %s1317_s1 = inlined_call_operand.hbm [shape: f32[1,32], index: 1, kind: input, shape index: {}]   ;;  %s1318_s2 = inlined_call_operand.hbm [shape: f32[8,8], index: 2, kind: input, shape index: {}]   ;;  %s1319_s3 = inlined_call_operand.hbm [shape: f32[88,128], index: 3, kind: input, shape index: {}]   ;;  %s1320_s4 = inlined_call_operand.hbm [shape: f32[8,1,128], index: 4, kind: output, shape index: {0}]   ;;  %s1321_s5 = inlined_call_operand.hbm [shape: f32[1,32], index: 5, kind: output, shape index: {1}]   ;;  %s1322_s6 = inlined_call_operand.hbm [shape: f32[8,8], index: 6, kind: output, shape index: {2}]  }
   0x1   :  { %14 = vsyncpa [#allocation5 + $0x1], 0 }
   0x2   :  { %15 = vsyncpa [#allocation8], 0 }
   0x3   :  { %16 = vsyncpa [#allocation11], 0 }
   0x4   :  { %17 = vsyncpa [#allocation6], 0 }
   0x5   :  { %19 = vsyncpa [#allocation6 + $0x1], 0 }
   0x6   :  { %20 = vsyncpa [#allocation14], 0  ;;  %s1121_s21 = smov 0   ;;  %s1123_s22 = smov 0  }
   0x7   :  { %s1125_s23 = smov 0   ;;  %s1127_s24 = smov 0  }
   0x8 LB: > { %s1142_s25 = sadd.s32 4294967295, %s1070_s24   ;;  %s676_s26 = sadd.s32 4294967294, %s1070_s24   ;;  %s1070_s24 = sphi %s1127_s24, %s1338_s24   ;;  %s1066_s23 = sphi %s1125_s23, %s1337_s23   ;;  %s1062_s22 = sphi %s1123_s22, %s1336_s22   ;;  %s1058_s21 = sphi %s1121_s21, %s1335_s21  }
   0x9   : > { %p46_p0 = scmp.ne.s32.totalorder %s1062_s22, %s1058_s21  ;;  %p47_p1 = scmp.eq.s32.totalorder %s1142_s25, 0 }
   0xa   : > { %p1323_p2 = scmp.eq.s32.totalorder %s1142_s25, 7  ;;  %p139_p3 = scmp.eq.s32.totalorder %s676_s26, 7 }
   0xb   : > { %p1151_p4 = por %p47_p1, %p46_p0  ;;  %p677_p5 = scmp.ge.s32.totalorder %s1070_s24, 1 }
   0xc   : > { %p1156_p6 = por %p139_p3, %p46_p0  ;;  %p188_p7 = scmp.lt.s32.totalorder %s1070_s24, 9 }
   0xd   : > { %s200_s7 = sshll.u32 %s1317_s1, 4  ;;  %s1072_s9 = smov [#allocation7]   ;;  %s201_s7 = int_to_ptr.hbm [resolvable:$true] %s200_s7 }
   0xe   : > { %p1165_p9 = pnand %p677_p5, %p188_p7  ;;  %s202_s10 = sshll.u32 %s1072_s9, 4  ;;  %s203_s10 = int_to_ptr.vmem [resolvable:$true] %s202_s10 }
   0xf   : > { %s212_s13 = sshll.u32 %s1318_s2, 4  ;;  %s223_s17 = sshll.u32 %s1319_s3, 4  ;;  %s213_s13 = int_to_ptr.hbm [resolvable:$true] %s212_s13  ;;  %s224_s17 = int_to_ptr.hbm [resolvable:$true] %s223_s17 }
  0x10   : > { %p728_p10 = pneg %p1165_p9  ;;  %s1073_s18 = smov [#allocation9]  }
  0x11   : > { %s214_s19 = sshll.u32 %s1073_s18, 4  ;;  %s1074_s20 = smov [#allocation10]   ;;  %s215_s19 = int_to_ptr.vmem [resolvable:$true] %s214_s19 }
  0x12   : > { %p1176_p11 = pnand %p728_p10, %p47_p1  ;;  %s225_s26 = sshll.u32 %s1074_s20, 4  ;;  %s226_s26 = int_to_ptr.vmem [resolvable:$true] %s225_s26 }
  0x13   : > { %s1075_s29 = smov 128   ;;  %s1076_s30 = smov 8  }
  0x14   : > { %731 = dma.hbm_to_vmem [thread:$0]  (!%p1176_p11), %s201_s7, 16, %s203_s10, [#allocation8]  }
  0x15   : > { %734 = dma.hbm_to_vmem [thread:$0]  (!%p1176_p11), %s213_s13, 128, %s215_s19, [#allocation8]  }
  0x16   : > { %737 = dma.hbm_to_vmem [thread:$0]  (!%p1176_p11), %s224_s17, 1408, %s226_s26, [#allocation11], %s1075_s29, %s1075_s29, %s1076_s30  }
  0x17   : > { %s1190_s9 = sadd.s32 1, %s1070_s24   ;;  %s33_s10 = sadd.s32 1, %s1066_s23 }
  0x18   : > { %s30_s7 = ssub.s32 %s1070_s24, %s1190_s9  ;;  %p40_p13 = scmp.ne.s32.totalorder %s1066_s23, %s1062_s22 }
  0x19   : > { %p31_p12 = scmp.eq.s32.totalorder %s30_s7, 0  ;;  %p41_p0 = scmp.eq.s32.totalorder %s1070_s24, 0 }
  0x1a   : > { %p749_p3 = scmp.lt.s32.totalorder %s1070_s24, 8  ;;  %p1204_p7 = por %p1323_p2, %p40_p13 }
  0x1b   : > { %s1200_s11 = scalar_select %p31_p12, %s1066_s23, %s33_s10  }
  0x1c   : > { %p42_p5 = por %p41_p0, %p40_p13  ;;  %s239_s13 = sand.u32 1, %s1066_s23  }
  0x1d   : > { %s245_s16 = scalar_lea.hbm %s1316_s0, %s1070_s24  ;;  %s242_s18 = scalar_lea.vmem [#allocation4], %s239_s13 }
  0x1e   : > { %s247_s17 = sshll.u32 %s245_s16, 4  ;;  %s249_s19 = sshll.u32 %s242_s18, 4  ;;  %s248_s17 = int_to_ptr.hbm [resolvable:$true] %s247_s17  ;;  %s250_s19 = int_to_ptr.vmem [resolvable:$true] %s249_s19 }
  0x1f   : > { %p1213_p10 = pnand %p749_p3, %p42_p5  ;;  %s240_s26 = scalar_lea.sflag [#allocation5], %s239_s13 }
  0x20   : > { %s906_s29 = sshra.s32 %s248_s17, 4  ;;  %s913_s14 = scalar_lea.hbm %s1316_s0, 8  ;;  %s907_s29 = int_to_ptr.hbm [resolvable:$true] %s906_s29 }
  0x21   : > { %s908_s30 = scalar_lea.hbm %s907_s29, 1  ;;  %p910_p12 = pneg %p1213_p10 }
  0x22   : > { %p909_p11 = scmp.ne.s32.totalorder %s907_s29, %s908_s30  ;;  %p914_p3 = scmp.lt.s32.totalorder %s907_s29, %s1316_s0 }
  0x23   : > { %p915_p5 = scmp.lt.s32.totalorder %s913_s14, %s908_s30 }
  0x24   : > { %p911_p13 = pnand %p910_p12, %p909_p11 }
  0x25   : > { %p916_p2 = por %p915_p5, %p914_p3 }
  0x26   : > { %p912_p0 = pneg %p911_p13 }
  0x28   : > { %p917_p8 = pnand %p916_p2, %p912_p0 }
  0x2a   : > { %920 = shalt.err (!%p917_p8)
}
  0x2b   : > { %741 = dma.hbm_to_vmem [thread:$0]  (!%p1213_p10), %s248_s17, 16, %s250_s19, %s240_s26  }
  0x2c   : > { %258 = sbr.rel (%p1165_p9) target bundleno = 1477 (0x5c5), region = 36  ;;  %s1230_s13 = sand.u32 (!%p1165_p9), 1, %s1062_s22  }
  0x2d   : > { %s261_s18 = scalar_lea.sflag (!%p1165_p9), [#allocation5], %s1230_s13  ;;  %s263_s7 = scalar_lea.vmem (!%p1165_p9), [#allocation4], %s1230_s13 }
  0x31   : > { %1037 = dma.done.wait (%p1151_p4), %s261_s18, 16  }
  0x32   : > { %1039 = vsyncadd (%p1151_p4), %s261_s18, 4294967280 }
  0x33   : > { %1041 = dma.done.wait (%p47_p1), [#allocation8], 144  }
  0x34   : > { %1043 = vsyncadd (%p47_p1), [#allocation8], 4294967152 }
  0x35   : > { %1045 = dma.done.wait (%p47_p1), [#allocation11], 1408  }
  0x36   : > { %1047 = vsyncadd (%p47_p1), [#allocation11], 4294965888  ;;  %s301_s8 = scalar_lea.vmem [#allocation12], %s1230_s13  ;;  %p1330_p2 = scmp.ne.s32.totalorder %s1142_s25, 0 }
  0x38   : > { %309 = sbr.rel (%p1330_p2) target bundleno = 64 (0x40), region = 56 }
  0x3d   : > { %v310_v0 = vld [vmem:[#allocation7] sm:$0x1]  ;;  %vm311_vm0 = vcmask 253952   ;;  %v313_v1 = vld [vmem:[#allocation9] sm:$0xff]  ;;  %vm314_vm1 = vcmask 64512  }
  0x3e   : > { %312 = vst.msk [vmem:[#allocation2] sm:$0x1] %vm311_vm0, %v310_v0 }
  0x3f   : > { %315 = vst.msk [vmem:[#allocation3] sm:$0xff] %vm314_vm1, %v313_v1 }
  0x40 PF: > { %v321_v2 = vld [vmem:[#allocation10 + $0x18] sm:$0xff]  ;;  %v320_v3 = vld [vmem:[#allocation10 + $0x10] sm:$0xff]  ;;  %v319_v4 = vld [vmem:[#allocation10 + $0x8] sm:$0xff]  ;;  %vm329_vm2 = vcmask 261120   ;;  %vm353_vm3 = vcmask 803584   ;;  %s1077_s27 = smov 32  }
  0x41   : > { %345 = vmatpush.msra.mxu0 %v321_v2  ;;  %v318_v5 = vld [vmem:[#allocation10] sm:$0xff]  ;;  %v327_v7 = vld [vmem:[#allocation10 + $0x48] sm:$0x1]  ;;  %s1078_s17 = smov 64   ;;  %vm364_vm4 = vcmask 16384   ;;  %s1079_s19 = smov 30  }
  0x42   : > { %s1080_s20 = smov 31   ;;  %s1081_s26 = smov 99   ;;  %vm393_vm9 = vcmask 1040384   ;;  %v326_v39 = vld [vmem:[#allocation10 + $0x40] sm:$0xff]  ;;  %vm387_vm10 = vcmask 1046528   ;;  %vm420_vm11 = vcmask 64512  }
  0x43   : > { %346 = vmatpush.msra.mxu0 %v320_v3  ;;  %s1082_s10 = smov 29   ;;  %441 = vmatpush.msra.mxu1 %v326_v39  ;;  %v422_v49 = vld [vmem:[%s263_s7] sm:$0x1]  ;;  %s1083_s15 = smov 96   ;;  %vm494_vm0 = vcmask 253952  }
  0x44   : > { %p691_p1 = scmp.ne.s32.totalorder %s1142_s25, 7 }
  0x45   : > { %347 = vmatpush.msra.mxu0 %v319_v4  ;;  %v316_v6 = vld [vmem:[#allocation2] sm:$0x1] }
  0x46   : > { %v317_v29 = vld [vmem:[#allocation3] sm:$0xff] }
  0x47   : > { %348 = vmatpush.msra.mxu0 %v318_v5  ;;  %v389_v30 = vrot.slane %v317_v29, 7  ;;  %v385_v40 = vrot.slane %v317_v29, 1 }
  0x48   : > { %687 = vmatmul.msk.f32.vlgmr.msra.gmra.mxu0 %vm329_vm2, %v316_v6 }
  0x49   : > { %v388_v42 = vsel %vm387_vm10, %v385_v40, 0.0 }
  0xc5   : > { %v350_v8 = vpop.f32.mrf.mxu0 }
  0xc6   : > { %v1250_v9 = vadd.f32 %v350_v8, %v327_v7  ;;  %v325_v7 = vld [vmem:[#allocation10 + $0x38] sm:$0xff]  ;;  %v324_v8 = vld [vmem:[#allocation10 + $0x30] sm:$0xff] }
  0xc7   : > { %510 = vmatpush.msra.mxu2 %v325_v7 }
  0xc8   : > { %v354_v10 = vsel %vm353_vm3, %v1250_v9, -inf }
  0xc9   : > { %355 = vmax.xlane.f32.xlu0 %v354_v10  ;;  %511 = vmatpush.msra.mxu2 %v324_v8  ;;  %v322_v10 = vld [vmem:[#allocation10 + $0x20] sm:$0xff] }
 0x13c   : > { %v356_v11 = vpop.xlane.xlu0 %355 }
 0x13d   : > { %v357_v12 = vsub.f32 %v1250_v9, %v356_v11 }
 0x13f   : > { %v358_v13 = vmul.f32 1.442695, %v357_v12 }
 0x141   : > { %804 = vpow2.f32 %v358_v13 }
 0x147   : > { %v805_v14 = vpop.eup %804 }
 0x148   : > { %361 = vrot.lane.b32.xlu0 %v805_v14, %s1077_s27 }
 0x150   : > { %468 = vrot.lane.b32.xlu0 %v1250_v9, %s1078_s17 }
 0x158   : > { %484 = vrot.lane.b32.xlu0 %v316_v6, %s1077_s27 }
 0x1ba   : > { %v362_v15 = vpop.permute.xlu0 %361 }
 0x1bb   : > { %v365_v16 = vsel %vm364_vm4, %v362_v15, 0.0 }
 0x1bc   : > { %366 = vadd.xlane.f32.xlu1 %v365_v16 }
 0x1c2   : > { %v469_v1 = vpop.permute.xlu0 %468 }
 0x1ca   : > { %v485_v11 = vpop.permute.xlu0 %484 }
 0x22f   : > { %v367_v17 = vpop.xlane.xlu1 %366 }
 0x230   : > { %806 = vrcp.f32 %v367_v17  ;;  %v379_v21 = vand.u32 2147483648, %v367_v17  ;;  %v377_v23 = vand.u32 2147483647, %v367_v17  ;;  %vm373_vm6 = vweird.f32 %v367_v17 }
 0x231   : > { %808 = vtanh.f32 %v1250_v9 }
 0x232   : > { %v380_v25 = vor.u32 1.1754944e-38, %v379_v21  ;;  %vm378_vm8 = vcmp.eq.f32.partialorder %v377_v23, 8.507059e+37 }
 0x236   : > { %v807_v18 = vpop.eup %806 }
 0x237   : > { %v369_v19 = vmul.f32 %v807_v18, %v367_v17  ;;  %vm374_vm5 = vweird.f32 %v807_v18  ;;  %v809_v35 = vpop.eup %808 }
 0x238   : > { %vm375_vm7 = vmor %vm373_vm6, %vm374_vm5 }
 0x239   : > { %v370_v20 = vsub.f32 1.0, %v369_v19  ;;  %v328_v19 = vld [vmem:[#allocation10 + $0x50] sm:$0x1] }
 0x23b   : > { %v371_v22 = vmul.f32 %v807_v18, %v370_v20 }
 0x23d   : > { %v372_v24 = vadd.f32 %v807_v18, %v371_v22 }
 0x23f   : > { %v376_v26 = vsel %vm375_vm7, %v807_v18, %v372_v24 }
 0x240   : > { %v381_v27 = vsel %vm378_vm8, %v380_v25, %v376_v26 }
 0x241   : > { %v382_v28 = vmul.f32 %v805_v14, %v381_v27 }
 0x243   : > { %402 = vrot.lane.b32.xlu2 %v382_v28, %s1077_s27  ;;  %396 = vrot.lane.b32.xlu1 %v382_v28, %s1079_s19 }
 0x24b   : > { %413 = vrot.lane.b32.xlu2 %v382_v28, %s1080_s20 }
 0x253   : > { %390 = vrot.lane.b32.xlu2 %v389_v30, %s1081_s26 }
 0x29d   : > { %v403_v31 = vpop.permute.xlu2 %402 }
 0x2a5   : > { %v414_v33 = vpop.permute.xlu2 %413 }
 0x2ad   : > { %v391_v34 = vpop.permute.xlu2 %390 }
 0x2ae   : > { %v394_v36 = vsel %vm393_vm9, %v809_v35, %v391_v34 }
 0x2b5   : > { %v397_v32 = vpop.permute.xlu1 %396 }
 0x2b6   : > { %698 = vpush %v397_v32 }
 0x2b7   : > { %700 = vpush %v403_v31 }
 0x2b8   : > { %702 = vpush %v414_v33 }
 0x2e7   : > { %s699_s29 = spop %698 }
 0x2e8   : > { %s701_s30 = spop %700  ;;  %v399_v41 = vstv %s699_s29 }
 0x2e9   : > { %v405_v37 = vstv %s701_s30  ;;  %s703_s14 = spop %702  ;;  %v401_v44 = vmul.f32 %v399_v41, %v317_v29 }
 0x2ea   : > { %v407_v38 = vmul.f32 %v405_v37, %v394_v36  ;;  %v416_v43 = vstv %s703_s14 }
 0x2eb   : > { %v418_v46 = vmul.f32 %v416_v43, %v388_v42 }
 0x2ec   : > { %409 = vrot.lane.b32.xlu2 %v407_v38, %s1082_s10 }
 0x346   : > { %v410_v45 = vpop.permute.xlu2 %409 }
 0x347   : > { %v412_v47 = vadd.f32 %v410_v45, %v401_v44 }
 0x349   : > { %v419_v48 = vadd.f32 %v418_v46, %v412_v47 }
 0x34b   : > { %421 = vst.msk [vmem:[#allocation3] sm:$0xff] %vm420_vm11, %v419_v48  ;;  %688 = vmatmul.msk.f32.vlgmr.msra.gmra.mxu1 %vm420_vm11, %v419_v48 }
 0x3c8   : > { %v443_v50 = vpop.f32.mrf.mxu1 }
 0x3c9   : > { %v446_v51 = vadd.f32 %v443_v50, %v422_v49 }
 0x3cb   : > { %v447_v52 = vadd.f32 %v446_v51, %v1250_v9  ;;  %v323_v9 = vld [vmem:[#allocation10 + $0x28] sm:$0xff] }
 0x3cc   : > { %512 = vmatpush.msra.mxu2 %v323_v9 }
 0x3cd   : > { %v689_v53 = vmul.f32 -1.442695, %v447_v52 }
 0x3ce   : > { %513 = vmatpush.msra.mxu2 %v322_v10 }
 0x3cf   : > { %810 = vpow2.f32 %v689_v53 }
 0x3d5   : > { %v811_v54 = vpop.eup %810 }
 0x3d6   : > { %v451_v55 = vadd.f32 1.0, %v811_v54 }
 0x3d8   : > { %812 = vrcp.f32 %v451_v55  ;;  %v463_v59 = vand.u32 2147483648, %v451_v55  ;;  %v461_v61 = vand.u32 2147483647, %v451_v55  ;;  %vm457_vm13 = vweird.f32 %v451_v55 }
 0x3da   : > { %v464_v63 = vor.u32 1.1754944e-38, %v463_v59  ;;  %vm462_vm15 = vcmp.eq.f32.partialorder %v461_v61, 8.507059e+37 }
 0x3de   : > { %v813_v56 = vpop.eup %812 }
 0x3df   : > { %v453_v57 = vmul.f32 %v813_v56, %v451_v55  ;;  %vm458_vm12 = vweird.f32 %v813_v56 }
 0x3e0   : > { %vm459_vm14 = vmor %vm457_vm13, %vm458_vm12 }
 0x3e1   : > { %v454_v58 = vsub.f32 1.0, %v453_v57 }
 0x3e3   : > { %v455_v60 = vmul.f32 %v813_v56, %v454_v58 }
 0x3e5   : > { %v456_v62 = vadd.f32 %v813_v56, %v455_v60 }
 0x3e7   : > { %v460_v0 = vsel %vm459_vm14, %v813_v56, %v456_v62 }
 0x3e8   : > { %v465_v2 = vsel %vm462_vm15, %v464_v63, %v460_v0 }
 0x3e9   : > { %v471_v3 = vmul.f32 %v469_v1, %v465_v2  ;;  %v478_v12 = vsub.f32 1.0, %v465_v2  ;;  %v487_v14 = vmul.f32 %v485_v11, %v465_v2 }
 0x3eb   : > { %473 = vrot.lane.b32.xlu2 %v471_v3, %s1078_s17 }
 0x445   : > { %v474_v4 = vpop.permute.xlu2 %473 }
 0x446   : > { %v476_v5 = vadd.f32 %v474_v4, %v446_v51 }
 0x448   : > { %814 = vtanh.f32 %v476_v5 }
 0x44e   : > { %v815_v6 = vpop.eup %814 }
 0x44f   : > { %480 = vrot.lane.b32.xlu1 %v815_v6, %s1083_s15 }
 0x4c1   : > { %v481_v13 = vpop.permute.xlu1 %480 }
 0x4c2   : > { %v483_v15 = vmul.f32 %v481_v13, %v478_v12 }
 0x4c4   : > { %v488_v16 = vadd.f32 %v487_v14, %v483_v15 }
 0x4c6   : > { %v490_v17 = vperm.slane %v488_v16, 0 }
 0x4c8   : > { %491 = vrot.lane.b32.xlu2 %v490_v17, %s1083_s15 }
 0x522   : > { %v492_v18 = vpop.permute.xlu2 %491 }
 0x523   : > { %495 = vst.msk [vmem:[#allocation2] sm:$0x1] %vm494_vm0, %v492_v18  ;;  %690 = vmatmul.msk.f32.vlgmr.msra.gmra.mxu2 %vm329_vm2, %v492_v18 }
 0x5a5   : > { %522 = sbr.rel (%p691_p1) target bundleno = 1452 (0x5ac), region = 60 }
 0x5a6   : > { %v515_v20 = vpop.f32.mrf.mxu2 }
 0x5a7   : > { %v516_v21 = vadd.f32 %v515_v20, %v328_v19 }
 0x5a9   : > { %518 = vst [vmem:[%s301_s8] sm:$0x1] %v516_v21 }
 0x5aa   : > { %523 = vst.msk [vmem:[#allocation13] sm:$0x1] %vm494_vm0, %v492_v18 }
 0x5ab   : > { %524 = vst.msk [vmem:[#allocation15] sm:$0xff] %vm420_vm11, %v419_v48 }
 0x5ac PF: > { %s550_s7 = sshll.u32 %s1321_s5, 4  ;;  %s1084_s27 = smov [#allocation13]   ;;  %s551_s7 = int_to_ptr.hbm [resolvable:$true] %s550_s7 }
 0x5ad   : > { %s548_s17 = sshll.u32 %s1084_s27, 4  ;;  %p1331_p4 = scmp.eq.s32.totalorder %s1142_s25, 7  ;;  %s549_s17 = int_to_ptr.vmem [resolvable:$true] %s548_s17 }
 0x5ae   : > { %s534_s26 = scalar_lea.hbm %s1320_s4, %s1142_s25  ;;  %s536_s29 = sshll.u32 %s301_s8, 4  ;;  %s537_s29 = int_to_ptr.vmem [resolvable:$true] %s536_s29 }
 0x5af   : > { %720 = dma.vmem_to_hbm [thread:$0]  (%p1331_p4), %s549_s17, 16, %s551_s7, [#allocation14]  }
 0x5b0   : > { %s538_s30 = sshll.u32 %s534_s26, 4  ;;  %s526_s10 = scalar_lea.sflag [#allocation6], %s1230_s13  ;;  %s539_s30 = int_to_ptr.hbm [resolvable:$true] %s538_s30 }
 0x5b1   : > { %s978_s14 = sshra.s32 %s539_s30, 4  ;;  %s984_s7 = scalar_lea.hbm %s1320_s4, 8  ;;  %s979_s14 = int_to_ptr.hbm [resolvable:$true] %s978_s14 }
 0x5b2   : > { %s980_s15 = scalar_lea.hbm %s979_s14, 1  ;;  %p985_p11 = scmp.lt.s32.totalorder %s979_s14, %s1320_s4 }
 0x5b3   : > { %p981_p8 = scmp.ne.s32.totalorder %s979_s14, %s980_s15  ;;  %p986_p12 = scmp.lt.s32.totalorder %s984_s7, %s980_s15 }
 0x5b5   : > { %p982_p9 = pnand %p981_p8, %p1204_p7  ;;  %p987_p13 = por %p986_p12, %p985_p11 }
 0x5b7   : > { %p983_p10 = pneg %p982_p9 }
 0x5b9   : > { %p988_p0 = pnand %p987_p13, %p983_p10 }
 0x5bb   : > { %991 = shalt.err (!%p988_p0)
}
 0x5bc   : > { %718 = dma.vmem_to_hbm [thread:$0]  (%p1204_p7), %s537_s29, 16, %s539_s30, %s526_s10  }
 0x5bd   : > { %s1085_s13 = smov [#allocation15]   ;;  %s562_s26 = sshll.u32 %s1322_s6, 4  ;;  %s563_s26 = int_to_ptr.hbm [resolvable:$true] %s562_s26 }
 0x5be   : > { %s560_s8 = sshll.u32 %s1085_s13, 4  ;;  %p1332_p3 = pmov %p1331_p4  ;;  %s561_s8 = int_to_ptr.vmem [resolvable:$true] %s560_s8 }
 0x5c0   : > { %722 = dma.vmem_to_hbm [thread:$0]  (%p1332_p3), %s561_s8, 128, %s563_s26, [#allocation14]  }
 0x5c1   : > { %p1333_p5 = pmov %p1332_p3 }
 0x5c2   : > { %p1334_p2 = pmov %p1332_p3 }
 0x5c3   : > { %1049 = dma.done.wait (%p1333_p5), [#allocation14], 144  }
 0x5c4   : > { %1051 = vsyncadd (%p1334_p2), [#allocation14], 4294967152 }
 0x5c5 PF: > { %p757_p7 = scmp.ge.s32.totalorder %s1070_s24, 2  ;;  %s584_s12 = sand.u32 1, %s1058_s21  }
 0x5c6   : > { %s585_s29 = scalar_lea.sflag [#allocation6], %s584_s12 }
 0x5c7   : > { %p743_p1 = pnand %p757_p7, %p1156_p6 }
 0x5c9   : > { %p744_p4 = pneg %p743_p1 }
 0x5cb   : > { %1053 = dma.done.wait (%p744_p4), %s585_s29, 16  }
 0x5cc   : > { %1055 = vsyncadd (%p744_p4), %s585_s29, 4294967280  ;;  %p23_p8 = scmp.ge.s32.totalorder %s1190_s9, 10   ;;  %s1335_s21 = smov %s1062_s22 }
 0x5cd   : > { %s1336_s22 = smov %s1066_s23  ;;  %s1337_s23 = smov %s1200_s11 }
 0x5ce   : > { %s1338_s24 = smov %s1190_s9  ;;  %25 = sbr.rel (!%p23_p8) target bundleno = 8 (0x8), region = 117 }
 0x5d3   :  { %590 = vsyncpa [#allocation5], 1 }
 0x5d4   :  { %592 = vsyncpa [#allocation5 + $0x1], 1 }
 0x5d5   :  { %593 = vsyncpa [#allocation8], 1 }
 0x5d6   :  { %594 = vsyncpa [#allocation11], 1 }
 0x5d7   :  { %595 = vsyncpa [#allocation6], 1 }
 0x5d8   :  { %597 = vsyncpa [#allocation6 + $0x1], 1 }
 0x5d9   :  { %598 = vsyncpa [#allocation14], 1 }

</bundles_post_ra>
